<compile_context>
chip_gen: v7x
topology: tpu7x:2x2x1
jax: 0.10.0
libtpu: 0.0.40
codegen_flags: <defaults>
</compile_context>

<pallas_src>
import jax
import jax.numpy as jnp
from jax.experimental import pallas as pl
from jax.experimental.pallas import tpu as pltpu


def _round_up(v, m):
    return ((v + m - 1) // m) * m


def mlp_kernel(x_ref, w1_ref, b1_ref, w2_ref, b2_ref, o_ref):
    # Layer 1: bf16 MXU matmul with f32 accumulation; bias + ReLU on the VPU in f32.
    x = x_ref[...].astype(w1_ref.dtype)          # cheap VPU cast, keeps x DMA minimal
    h = jnp.dot(x, w1_ref[...], preferred_element_type=jnp.float32)
    h = jnp.maximum(h + b1_ref[...], 0.0)        # b1 is (1, hid_p), broadcasts over rows
    # Layer 2: re-cast activation to bf16 for the second MXU pass, accumulate in f32.
    logits = jnp.dot(h.astype(w2_ref.dtype), w2_ref[...],
                     preferred_element_type=jnp.float32) + b2_ref[...]
    o_ref[...] = logits.astype(o_ref.dtype)


def init_params(key, obs_dim, act_dim, hidden_size):
    """nn.Linear-style init; weights stored [in_features, out_features] (pre-transposed)."""
    k1, k2, k3, k4 = jax.random.split(key, 4)
    bound1 = 1.0 / jnp.sqrt(obs_dim)
    bound2 = 1.0 / jnp.sqrt(hidden_size)
    w1 = jax.random.uniform(k1, (obs_dim, hidden_size), jnp.float32, -bound1, bound1)
    b1 = jax.random.uniform(k2, (1, hidden_size), jnp.float32, -bound1, bound1)
    w2 = jax.random.uniform(k3, (hidden_size, act_dim), jnp.float32, -bound2, bound2)
    b2 = jax.random.uniform(k4, (1, act_dim), jnp.float32, -bound2, bound2)
    return w1, b1, w2, b2


def prepare_params(w1, b1, w2, b2, *, lane_multiple=128, compute_dtype=jnp.bfloat16):
    """One-time parameter prep (call at init, NOT per forward).

    Zero-pads the hidden dim to a lane multiple (exact: padded hidden columns/rows are
    zero so they contribute nothing) and casts the matmul operands to bf16. Biases stay
    f32. obs_dim / act_dim are left unpadded; Mosaic pads them inside VMEM.
    """
    obs_dim, hidden = w1.shape
    act_dim = w2.shape[1]
    hid_p = _round_up(hidden, lane_multiple)
    w1_p = jnp.pad(w1, ((0, 0), (0, hid_p - hidden))).astype(compute_dtype)
    b1_p = jnp.pad(b1, ((0, 0), (0, hid_p - hidden))).astype(jnp.float32)
    w2_p = jnp.pad(w2, ((0, hid_p - hidden), (0, 0))).astype(compute_dtype)
    b2_p = b2.astype(jnp.float32)
    return w1_p, b1_p, w2_p, b2_p


def _choose_batch_tile(batch, max_batch_tile):
    if batch <= 8:
        return batch  # single full-array tile: no batch padding, no output slice
    # Aim for >= 2 tiles so v7x's two TensorCores both get work; keep tiles 8-aligned.
    tb = _round_up(pl.cdiv(batch, 2), 8)
    return min(tb, max_batch_tile)


def discrete_policy_forward(x, w1_p, b1_p, w2_p, b2_p, *, max_batch_tile=1024):
    """Pallas equivalent of DiscretePolicyNetwork.forward.

    x:    [B, obs_dim] float32 (unpadded)
    w1_p: [obs_dim, hid_p] bf16   b1_p: [1, hid_p] f32
    w2_p: [hid_p, act_dim] bf16   b2_p: [1, act_dim] f32
    returns logits: [B, act_dim] float32
    """
    B, obs_dim = x.shape
    hid_p = w1_p.shape[1]
    act_dim = w2_p.shape[1]

    tb = _choose_batch_tile(B, max_batch_tile)
    b_p = _round_up(B, tb)
    x_in = jnp.pad(x, ((0, b_p - B), (0, 0))) if b_p != B else x
    grid = (b_p // tb,)

    # Scoped-VMEM budget: double-buffered x/out tiles + (default double-buffered) resident
    # weights + f32 activation staging, with 2x headroom, clamped to be valid on all gens.
    working = (
        2 * tb * obs_dim * x.dtype.itemsize
        + 2 * tb * act_dim * 4
        + 2 * (w1_p.size * w1_p.dtype.itemsize + w2_p.size * w2_p.dtype.itemsize)
        + 2 * (b1_p.size + b2_p.size) * 4
        + tb * hid_p * 4
    )
    vmem_limit = int(min(max(2 * working, 16 * 1024 * 1024), 32 * 1024 * 1024))

    out = pl.pallas_call(
        mlp_kernel,
        out_shape=jax.ShapeDtypeStruct((b_p, act_dim), jnp.float32),
        grid_spec=pltpu.PrefetchScalarGridSpec(
            num_scalar_prefetch=0,
            grid=grid,
            in_specs=[
                # Batch tiles of x stream through the pipeline (lane dim = true obs_dim).
                pl.BlockSpec((tb, obs_dim), lambda i: (i, 0)),
                # Weights / biases: same block every step -> DMA'd once, VMEM-resident.
                pl.BlockSpec((obs_dim, hid_p), lambda i: (0, 0)),
                pl.BlockSpec((1, hid_p), lambda i: (0, 0)),
                pl.BlockSpec((hid_p, act_dim), lambda i: (0, 0)),
                pl.BlockSpec((1, act_dim), lambda i: (0, 0)),
            ],
            out_specs=pl.BlockSpec((tb, act_dim), lambda i: (i, 0)),
        ),
        compiler_params=pltpu.CompilerParams(
            dimension_semantics=("parallel",),
            vmem_limit_bytes=vmem_limit,
        ),
    )(x_in, w1_p, b1_p, w2_p, b2_p)

    return out if b_p == B else out[:B]


if __name__ == "__main__":
    obs_dim, act_dim, hidden_size = 16, 8, 32

    key = jax.random.PRNGKey(0)
    kx, kp = jax.random.split(key)
    w1, b1, w2, b2 = init_params(kp, obs_dim, act_dim, hidden_size)
    params = prepare_params(w1, b1, w2, b2)  # one-time prep (padding + bf16 cast)

    fwd = jax.jit(discrete_policy_forward)

    # batch=2: single-tile fast path (no pad/slice).  batch=37: multi-tile path with
    # batch padding + row slice, exercising the 2-tile "parallel" grid.
    for batch in (2, 37):
        x = jax.random.normal(jax.random.fold_in(kx, batch), (batch, obs_dim), jnp.float32)
        logits = fwd(x, *params)
        jax.block_until_ready(logits)

        # f32 reference (module semantics); bf16 operands => loosened tolerance.
        ref = jnp.maximum(x @ w1 + b1, 0.0) @ w2 + b2
        assert logits.shape == (batch, act_dim)
        assert jnp.allclose(logits, ref, atol=2e-2, rtol=2e-2)

    print("KERNEL_OK")
</pallas_src>

<mosaic_0001>
module attributes {stable_mosaic.version = 11 : i64} {
  func.func @mlp_kernel(%arg0: i32, %arg1: memref<2x16xf32, #tpu.memory_space<vmem>>, %arg2: memref<16x128xbf16, #tpu.memory_space<vmem>>, %arg3: memref<1x128xf32, #tpu.memory_space<vmem>>, %arg4: memref<128x8xbf16, #tpu.memory_space<vmem>>, %arg5: memref<1x8xf32, #tpu.memory_space<vmem>>, %arg6: memref<2x8xf32, #tpu.memory_space<vmem>>) attributes {dimension_semantics = [#tpu.dimension_semantics<parallel>], iteration_bounds = array<i64: 1>, scalar_prefetch = 0 : i64, scratch_operands = 0 : i64, tpu.core_type = #tpu.core_type<tc>, window_params = [{transform_indices = @transform_0, window_bounds = array<i64: 2, 16>}, {pipeline_mode = #tpu.pipeline_mode<synchronous>, transform_indices = @transform_1, window_bounds = array<i64: 16, 128>}, {pipeline_mode = #tpu.pipeline_mode<synchronous>, transform_indices = @transform_2, window_bounds = array<i64: 1, 128>}, {pipeline_mode = #tpu.pipeline_mode<synchronous>, transform_indices = @transform_3, window_bounds = array<i64: 128, 8>}, {pipeline_mode = #tpu.pipeline_mode<synchronous>, transform_indices = @transform_4, window_bounds = array<i64: 1, 8>}, {transform_indices = @transform_5, window_bounds = array<i64: 2, 8>}]} {
    %c0 = arith.constant 0 : index
    %c0_0 = arith.constant 0 : index
    %0 = vector.load %arg1[%c0, %c0_0] : memref<2x16xf32, #tpu.memory_space<vmem>>, vector<2x16xf32>
    %1 = arith.truncf %0 : vector<2x16xf32> to vector<2x16xbf16>
    %c0_1 = arith.constant 0 : index
    %c0_2 = arith.constant 0 : index
    %2 = vector.load %arg2[%c0_1, %c0_2] : memref<16x128xbf16, #tpu.memory_space<vmem>>, vector<16x128xbf16>
    %cst = arith.constant dense<0.000000e+00> : vector<2x128xf32>
    %3 = tpu.matmul %1, %2, %cst {dimension_numbers = #tpu.dot_dimension_numbers<[1], [0], [0], [1], [0, 0, 1, 1], [], []>} : vector<2x16xbf16>, vector<16x128xbf16>, vector<2x128xf32> -> vector<2x128xf32>
    %c0_3 = arith.constant 0 : index
    %c0_4 = arith.constant 0 : index
    %4 = vector.load %arg3[%c0_3, %c0_4] : memref<1x128xf32, #tpu.memory_space<vmem>>, vector<1x128xf32>
    %5 = vector.broadcast %4 : vector<1x128xf32> to vector<2x128xf32>
    %6 = arith.addf %3, %5 : vector<2x128xf32>
    %cst_5 = arith.constant 0.000000e+00 : f32
    %7 = vector.broadcast %cst_5 : f32 to vector<2x128xf32>
    %8 = arith.maximumf %6, %7 : vector<2x128xf32>
    %9 = arith.truncf %8 : vector<2x128xf32> to vector<2x128xbf16>
    %c0_6 = arith.constant 0 : index
    %c0_7 = arith.constant 0 : index
    %10 = vector.load %arg4[%c0_6, %c0_7] : memref<128x8xbf16, #tpu.memory_space<vmem>>, vector<128x8xbf16>
    %cst_8 = arith.constant dense<0.000000e+00> : vector<2x8xf32>
    %11 = tpu.matmul %9, %10, %cst_8 {dimension_numbers = #tpu.dot_dimension_numbers<[1], [0], [0], [1], [0, 0, 1, 1], [], []>} : vector<2x128xbf16>, vector<128x8xbf16>, vector<2x8xf32> -> vector<2x8xf32>
    %c0_9 = arith.constant 0 : index
    %c0_10 = arith.constant 0 : index
    %12 = vector.load %arg5[%c0_9, %c0_10] : memref<1x8xf32, #tpu.memory_space<vmem>>, vector<1x8xf32>
    %13 = vector.broadcast %12 : vector<1x8xf32> to vector<2x8xf32>
    %14 = arith.addf %11, %13 : vector<2x8xf32>
    %c0_11 = arith.constant 0 : index
    %c0_12 = arith.constant 0 : index
    %15 = vector.load %arg6[%c0_11, %c0_12] : memref<2x8xf32, #tpu.memory_space<vmem>>, vector<2x8xf32>
    tpu.vector_store %arg6[%c0_11, %c0_12], %14 {strides = array<i32>} : memref<2x8xf32, #tpu.memory_space<vmem>>, vector<2x8xf32>,
    return
  }
  func.func @transform_0(%arg0: i32) -> (i32, i32) {
    %c0_i32 = arith.constant 0 : i32
    %c0_i32_0 = arith.constant 0 : i32
    return %arg0, %c0_i32 : i32, i32
  }
  func.func @transform_1(%arg0: i32) -> (i32, i32) {
    %c0_i32 = arith.constant 0 : i32
    %c0_i32_0 = arith.constant 0 : i32
    %c0_i32_1 = arith.constant 0 : i32
    return %c0_i32, %c0_i32_0 : i32, i32
  }
  func.func @transform_2(%arg0: i32) -> (i32, i32) {
    %c0_i32 = arith.constant 0 : i32
    %c0_i32_0 = arith.constant 0 : i32
    %c0_i32_1 = arith.constant 0 : i32
    return %c0_i32, %c0_i32_0 : i32, i32
  }
  func.func @transform_3(%arg0: i32) -> (i32, i32) {
    %c0_i32 = arith.constant 0 : i32
    %c0_i32_0 = arith.constant 0 : i32
    %c0_i32_1 = arith.constant 0 : i32
    return %c0_i32, %c0_i32_0 : i32, i32
  }
  func.func @transform_4(%arg0: i32) -> (i32, i32) {
    %c0_i32 = arith.constant 0 : i32
    %c0_i32_0 = arith.constant 0 : i32
    %c0_i32_1 = arith.constant 0 : i32
    return %c0_i32, %c0_i32_0 : i32, i32
  }
  func.func @transform_5(%arg0: i32) -> (i32, i32) {
    %c0_i32 = arith.constant 0 : i32
    %c0_i32_0 = arith.constant 0 : i32
    return %arg0, %c0_i32 : i32, i32
  }
}

</mosaic_0001>

<bundles_post_ra>
// kernel: discrete_policy_forward.1
= control target key start
LH: loop header
LB: loop body
LE: loop exit
PB: predicated region body
PF: predicated region fallthrough
CT: control target
= control target key end

     0   :  { %v297_v1 = vmov 0.0   ;;  %vm298_vm0 = vmmov 0   ;;  %vm39_vm1 = vcmask 130048   ;;  %s378_s0 = inlined_call_operand.vmem [shape: f32[2,16], index: 0, kind: input, shape index: {}]   ;;  %s379_s1 = inlined_call_operand.vmem [shape: bf16[16,128], index: 1, kind: input, shape index: {}]   ;;  %s380_s2 = inlined_call_operand.vmem [shape: f32[1,128], index: 2, kind: input, shape index: {}]   ;;  %s381_s3 = inlined_call_operand.vmem [shape: bf16[128,8], index: 3, kind: input, shape index: {}]   ;;  %s382_s4 = inlined_call_operand.vmem [shape: f32[1,8], index: 4, kind: input, shape index: {}]   ;;  %s383_s5 = inlined_call_operand.hbm [shape: f32[2,8], index: 5, kind: output, shape index: {}]  }
   0x1   :  { %v264_v0 = vld [vmem:[%s379_s1] sm:$0xff]   ;;  %235 = vmatprep.subr.bf16.mxu0 %v297_v1  ;;  %241 = vmatprep.subr.bf16.mxu1 %v297_v1  ;;  %v266_v5 = vld [vmem:[%s381_s3 + $0x8] sm:$0xff]   ;;  %v267_v6 = vld [vmem:[%s381_s3 + $0x10] sm:$0xff]  }
   0x2   :  { %v22_v2 = vld [vmem:[%s378_s0] sm:$0x3]  ;;  %236 = vmatpush3.bf16.msra.mxu0 %v264_v0  ;;  %237 = vmatprep.mubr.msk.bf16.mxu0 %vm298_vm0, %v297_v1 }
   0x3   :  { %v23_v3 = vpack.c.bf16 %v22_v2, %v22_v2  ;;  %v265_v4 = vld [vmem:[%s381_s3] sm:$0xff]   ;;  %257 = vmatprep.mubr.msk.bf16.mxu1 %vm298_vm0, %v297_v1 }
   0x4   :  { %242 = vmatpush3.bf16.msra.mxu1 %v265_v4 }
   0x5   :  { %238 = vmatmul.mubr.msk.bf16.vlgmr.msra.gmra.mrb[0].mxu0 %vm39_vm1, %v23_v3  ;;  %243 = vmatprep.subr.bf16.mxu1 %v297_v1 }
   0x8   :  { %244 = vmatpush3.bf16.msra.mxu1 %v266_v5 }
   0x9   :  { %245 = vmatprep.subr.bf16.mxu1 %v297_v1 }
   0xa   :  { %10 = vsyncpa [#allocation3], 0  ;;  %v268_v7 = vld [vmem:[%s381_s3 + $0x18] sm:$0xff]   ;;  %v269_v8 = vld [vmem:[%s381_s3 + $0x20] sm:$0xff]   ;;  %s299_s15 = smov [#allocation2]   ;;  %vm196_vm2 = vcmask 58368  }
   0xb   :  { %v270_v9 = vld [vmem:[%s381_s3 + $0x28] sm:$0xff]   ;;  %v271_v10 = vld [vmem:[%s381_s3 + $0x30] sm:$0xff]   ;;  %v272_v11 = vld [vmem:[%s381_s3 + $0x38] sm:$0xff]   ;;  %s204_s16 = sshll.u32 %s299_s15, 4  ;;  %s205_s16 = int_to_ptr.vmem [resolvable:$true] %s204_s16 }
   0xc   :  { %246 = vmatpush3.bf16.msra.mxu1 %v267_v6  ;;  %v212_v12 = vld [vmem:[%s380_s2] ss:$0 sm:$0xff]  ;;  %s273_s2 = scalar_lea.vmem %s205_s16, 32  ;;  %p278_p1 = scmp.lt.s32.totalorder %s205_s16, %s205_s16 }
   0xd   :  { %247 = vmatprep.subr.bf16.mxu1 %v297_v1  ;;  %v215_v20 = vld [vmem:[%s382_s4] ss:$0 sm:$0xff]  ;;  %p274_p0 = scmp.ne.s32.totalorder %s205_s16, %s273_s2  ;;  %p279_p2 = scmp.lt.s32.totalorder %s273_s2, %s273_s2 }
   0xf   :  { %p280_p3 = por %p279_p2, %p278_p1 }
  0x10   :  { %248 = vmatpush3.bf16.msra.mxu1 %v268_v7 }
  0x11   :  { %249 = vmatprep.subr.bf16.mxu1 %v297_v1  ;;  %p281_p4 = pnand %p280_p3, %p274_p0 }
  0x14   :  { %250 = vmatpush3.bf16.msra.mxu1 %v269_v8 }
  0x15   :  { %251 = vmatprep.subr.bf16.mxu1 %v297_v1 }
  0x18   :  { %252 = vmatpush3.bf16.msra.mxu1 %v270_v9 }
  0x19   :  { %253 = vmatprep.subr.bf16.mxu1 %v297_v1 }
  0x1c   :  { %254 = vmatpush3.bf16.msra.mxu1 %v271_v10 }
  0x1d   :  { %255 = vmatprep.subr.bf16.mxu1 %v297_v1 }
  0x20   :  { %256 = vmatpush3.bf16.msra.mxu1 %v272_v11 }
  0xd8   :  { %v77_v13 = vpop.f32.mrb[0].mxu0 }
  0xd9   :  { %v78_v14 = vadd.f32 %v212_v12, %v77_v13  ;;  %v239_v15 = vpop.f32.mrb[1].mxu0 }
  0xda   :  { %v80_v16 = vpop.f32.mrb[2].mxu0 }
  0xdb   :  { %v83_v17 = vmax.f32 %v78_v14, 0.0  ;;  %v240_v18 = vpop.f32.mrb[3].mxu0 }
  0xdd   :  { %v84_v19 = vpack.c.bf16 %v83_v17, %v83_v17 }
  0xdf   :  { %258 = vmatmul.mubr.bf16.vlgmr.msra.gmra.mrb[0].mxu1 %v84_v19 }
 0x1b2   :  { %v190_v21 = vpop.f32.mrb[0].mxu1 }
 0x1b3   :  { %v191_v22 = vadd.f32 %v215_v20, %v190_v21  ;;  %v259_v23 = vpop.f32.mrb[1].mxu1 }
 0x1b4   :  { %v193_v24 = vpop.f32.mrb[2].mxu1 }
 0x1b5   :  { %v260_v25 = vpop.f32.mrb[3].mxu1  ;;  %197 = vst.msk [vmem:[#allocation2] sm:$0x3] %vm196_vm2, %v191_v22 }
 0x1b6   :  { %284 = shalt.err (!%p281_p4)
}
 0x1b7   :  { %s285_s4 = scalar_lea.hbm %s383_s5, 32 }
 0x1b8   :  { %p286_p5 = scmp.ne.s32.totalorder %s383_s5, %s285_s4  ;;  %p289_p6 = scmp.lt.u32.totalorder %s285_s4, %s383_s5 }
 0x1ba   :  { %p291_p7 = pnand %p289_p6, %p286_p5 }
 0x1bc   :  { %294 = shalt.err (!%p291_p7)
}
 0x1bd   :  { %207 = dma.vmem_to_hbm [thread:$0]  %s205_s16, 32, %s383_s5, [#allocation3]  }
 0x1be   :  { %295 = dma.done.wait [#allocation3], 32  }
 0x1bf   :  { %296 = vsyncadd [#allocation3], 4294967264 }
 0x1c0   :  { %211 = vsyncpa [#allocation3], 1 }

</bundles_post_ra>
